<compile_context>
chip_gen: v6e
topology: v6e:2x2x1
jax: 0.10.0
libtpu: 0.0.40
codegen_flags: <defaults>
</compile_context>

<pallas_src>
import functools

import jax
import jax.numpy as jnp
from jax.experimental import pallas as pl
from jax.experimental.pallas import tpu as pltpu

_LANES = 128
_ACC_ROWS = 512                   # fixed accumulator height (256 KiB f32)
_DEFAULT_MAX_BLOCK_ROWS = 4096    # 2 MiB per f32 input tile
_V7X_MAX_BLOCK_ROWS = 8192        # v7x: higher HBM BW -> amortize more/step
_SMALL_N_FALLBACK = 1 << 16       # below this, launch overhead dominates
_VMEM_LIMIT_BYTES = 32 * 1024 * 1024


def _device_kind():
    try:
        return jax.devices()[0].device_kind.lower()
    except Exception:
        return ""


def _default_max_block_rows():
    kind = _device_kind()
    if "v7" in kind or "7x" in kind:
        return _V7X_MAX_BLOCK_ROWS
    return _DEFAULT_MAX_BLOCK_ROWS


def _default_num_splits():
    # Only v7x has 2 TensorCores per chip; on single-TC chips the split only
    # costs a duplicated clamped DMA and a second zero/finalize pass.
    kind = _device_kind()
    if "v7" in kind or "7x" in kind:
        return 2
    return 1


def _quantile_loss_kernel(
    pred_ref,
    target_ref,
    out_ref,
    acc_ref,
    *,
    quantile,
    rows,
    block_rows,
    acc_rows,
    blocks_per_split,
    n_row_blocks,
    may_have_dups,
):
    s = pl.program_id(0)  # parallel split
    k = pl.program_id(1)  # sequential reduction step within the split

    @pl.when(k == 0)
    def _():
        acc_ref[...] = jnp.zeros_like(acc_ref)

    # Logical row-block index this step is responsible for.
    blk = s * blocks_per_split + k
    has_ragged_rows = (rows % block_rows) != 0  # static

    def accumulate(mask_rows):
        # Cast to f32 in-register (HBM traffic stays at the input dtype width).
        p = pred_ref[...].astype(jnp.float32)
        t = target_ref[...].astype(jnp.float32)
        err = t - p
        losses = jnp.maximum(quantile * err, (quantile - 1.0) * err)
        if mask_rows:
            # Row-only comparison against the valid row count; Pallas does not
            # zero-fill the out-of-bounds rows of the last (partial) block.
            row = jax.lax.broadcasted_iota(jnp.int32, (block_rows, _LANES), 0)
            losses = jnp.where(blk * block_rows + row < rows, losses, 0.0)
        if block_rows == acc_rows:
            acc_ref[...] += losses
        else:
            # Leading-axis fold: pure VPU vreg adds, no cross-lane movement.
            acc_ref[...] += losses.reshape(
                block_rows // acc_rows, acc_rows, _LANES
            ).sum(axis=0)

    if has_ragged_rows:
        # Interior blocks: no mask work at all.
        @pl.when(blk < n_row_blocks - 1)
        def _():
            accumulate(mask_rows=False)

        # Last block only: gated row mask.  (Duplicated clamped steps with
        # blk >= n_row_blocks match neither branch and are skipped.)
        @pl.when(blk == n_row_blocks - 1)
        def _():
            accumulate(mask_rows=True)
    elif may_have_dups:
        @pl.when(blk < n_row_blocks)
        def _():
            accumulate(mask_rows=False)
    else:
        accumulate(mask_rows=False)

    @pl.when(k == pl.num_programs(1) - 1)
    def _():
        # Single cross-sublane reduction at the very end -> (1, 128) partials,
        # written into row 0 of a sublane-aligned (8, 128) output block.
        red = jnp.sum(acc_ref[...], axis=0, keepdims=True)
        row = jax.lax.broadcasted_iota(jnp.int32, (8, _LANES), 0)
        out_ref[0] = jnp.where(row == 0, red, 0.0)


def quantile_loss(pred, target, quantile=0.5, *, use_pallas=None,
                  num_splits=None, max_block_rows=None):
    """Computes mean(max(q*(t-p), (q-1)*(t-p))) over all elements."""
    assert pred.shape == target.shape
    quantile = float(quantile)
    n_elems = int(pred.size)

    if use_pallas is None:
        use_pallas = n_elems >= _SMALL_N_FALLBACK
    if n_elems < _LANES:
        use_pallas = False  # nothing lane-aligned to feed the kernel

    if not use_pallas:
        # Tiny-input fast path: pallas launch + grid overhead would dominate.
        err = target.astype(jnp.float32) - pred.astype(jnp.float32)
        return jnp.mean(jnp.maximum(quantile * err, (quantile - 1.0) * err))

    p_flat = pred.reshape(-1)
    t_flat = target.reshape(-1)

    # 128-aligned prefix goes through the kernel (contiguous reshape only);
    # the <=127-element ragged tail is handled in plain JAX below.
    rows = n_elems // _LANES
    n_main = rows * _LANES
    p2 = p_flat[:n_main].reshape(rows, _LANES)
    t2 = t_flat[:n_main].reshape(rows, _LANES)

    if max_block_rows is None:
        max_block_rows = _default_max_block_rows()
    if num_splits is None:
        num_splits = _default_num_splits()

    block_rows = rows if rows <= max_block_rows else int(max_block_rows)
    n_row_blocks = pl.cdiv(rows, block_rows)
    num_splits = max(1, min(int(num_splits), n_row_blocks))
    blocks_per_split = pl.cdiv(n_row_blocks, num_splits)
    may_have_dups = blocks_per_split * num_splits > n_row_blocks

    # Accumulator decoupled from block_rows whenever the tile is a clean
    # multiple of the fixed accumulator height.
    acc_rows = _ACC_ROWS if (block_rows % _ACC_ROWS == 0) else block_rows

    if may_have_dups:
        def in_index_map(s, k):
            # Clamp so a split's trailing (empty) steps never issue a fully
            # out-of-bounds DMA; the kernel skips accumulation for those steps.
            return (jnp.minimum(s * blocks_per_split + k, n_row_blocks - 1), 0)
    else:
        def in_index_map(s, k):
            return (s * blocks_per_split + k, 0)

    kernel = functools.partial(
        _quantile_loss_kernel,
        quantile=quantile,
        rows=rows,
        block_rows=block_rows,
        acc_rows=acc_rows,
        blocks_per_split=blocks_per_split,
        n_row_blocks=n_row_blocks,
        may_have_dups=may_have_dups,
    )

    itemsize = int(jnp.dtype(p2.dtype).itemsize)
    cost = pl.CostEstimate(
        flops=5 * n_main,
        transcendentals=0,
        bytes_accessed=2 * n_main * itemsize + num_splits * 8 * _LANES * 4,
    )

    partials = pl.pallas_call(
        kernel,
        out_shape=jax.ShapeDtypeStruct((num_splits, 8, _LANES), jnp.float32),
        grid_spec=pltpu.PrefetchScalarGridSpec(
            num_scalar_prefetch=0,
            grid=(num_splits, blocks_per_split),
            in_specs=[
                pl.BlockSpec((block_rows, _LANES), in_index_map),
                pl.BlockSpec((block_rows, _LANES), in_index_map),
            ],
            out_specs=pl.BlockSpec((1, 8, _LANES), lambda s, k: (s, 0, 0)),
            scratch_shapes=[pltpu.VMEM((acc_rows, _LANES), jnp.float32)],
        ),
        compiler_params=pltpu.CompilerParams(
            dimension_semantics=("parallel", "arbitrary"),
            vmem_limit_bytes=_VMEM_LIMIT_BYTES,
        ),
        cost_estimate=cost,
    )(p2, t2)

    total = jnp.sum(partials)

    # Ragged lane tail (<=127 elements) folded in plain JAX.
    tail = n_elems - n_main
    if tail:
        pt = p_flat[n_main:].astype(jnp.float32)
        tt = t_flat[n_main:].astype(jnp.float32)
        err_t = tt - pt
        total = total + jnp.sum(
            jnp.maximum(quantile * err_t, (quantile - 1.0) * err_t))

    return total / jnp.float32(n_elems)


if __name__ == "__main__":
    key = jax.random.PRNGKey(0)
    k1, k2, k3, k4 = jax.random.split(key, 4)

    # (1) Small regression-head-sized input; force the Pallas path so the
    #     kernel itself is exercised even below the fallback threshold.
    q1 = 0.5
    pred1 = jax.random.normal(k1, (2, 4, 16, 16), dtype=jnp.float32)
    target1 = jax.random.normal(k2, (2, 4, 16, 16), dtype=jnp.float32)
    loss1 = jax.block_until_ready(
        quantile_loss(pred1, target1, quantile=q1, use_pallas=True))
    err1 = target1 - pred1
    ref1 = jnp.mean(jnp.maximum(q1 * err1, (q1 - 1.0) * err1))
    assert jnp.allclose(loss1, ref1, rtol=1e-5, atol=1e-6), (loss1, ref1)

    # (2) Ragged size (not a multiple of 128) with small tiles / 2 splits to
    #     exercise multi-block reduction, the fixed-height accumulator
    #     reshape-sum, the gated last-block row mask, the duplicated-step
    #     skip, and the plain-JAX lane tail.
    q2 = 0.3
    pred2 = jax.random.normal(k3, (2, 125, 1283), dtype=jnp.float32)
    target2 = jax.random.normal(k4, (2, 125, 1283), dtype=jnp.float32)
    loss2 = jax.block_until_ready(
        quantile_loss(pred2, target2, quantile=q2, use_pallas=True,
                      num_splits=2, max_block_rows=1024))
    err2 = target2 - pred2
    ref2 = jnp.mean(jnp.maximum(q2 * err2, (q2 - 1.0) * err2))
    assert jnp.allclose(loss2, ref2, rtol=1e-5, atol=1e-6), (loss2, ref2)

    # (3) Same ragged input through the default (auto-tuned) configuration.
    loss3 = jax.block_until_ready(quantile_loss(pred2, target2, quantile=q2))
    assert jnp.allclose(loss3, ref2, rtol=1e-5, atol=1e-6), (loss3, ref2)

    print("KERNEL_OK")
</pallas_src>

<mosaic_0001>
module attributes {stable_mosaic.version = 11 : i64} {
  func.func @_quantile_loss_kernel(%arg0: i32, %arg1: i32, %arg2: memref<16x128xf32, #tpu.memory_space<vmem>>, %arg3: memref<16x128xf32, #tpu.memory_space<vmem>>, %arg4: memref<1x8x128xf32, #tpu.memory_space<vmem>>, %arg5: memref<16x128xf32, #tpu.memory_space<vmem>>) attributes {dimension_semantics = [#tpu.dimension_semantics<parallel>, #tpu.dimension_semantics<arbitrary>], iteration_bounds = array<i64: 1, 1>, scalar_prefetch = 0 : i64, scratch_operands = 1 : i64, tpu.core_type = #tpu.core_type<tc>, window_params = [{transform_indices = @transform_0, window_bounds = array<i64: 16, 128>}, {transform_indices = @transform_1, window_bounds = array<i64: 16, 128>}, {transform_indices = @transform_2, window_bounds = array<i64: 1, 8, 128>}]} {
    %c0_i32 = arith.constant 0 : i32
    %0 = arith.cmpi eq, %arg1, %c0_i32 : i32
    %1 = arith.extui %0 : i1 to i32
    %c0_i32_0 = arith.constant 0 : i32
    %2 = arith.cmpi ne, %1, %c0_i32_0 : i32
    scf.if %2 {
      %cst_11 = arith.constant 0.000000e+00 : f32
      %17 = vector.broadcast %cst_11 : f32 to vector<16x128xf32>
      %c0_12 = arith.constant 0 : index
      %c0_13 = arith.constant 0 : index
      %18 = vector.load %arg5[%c0_12, %c0_13] : memref<16x128xf32, #tpu.memory_space<vmem>>, vector<16x128xf32>
      tpu.vector_store %arg5[%c0_12, %c0_13], %17 {strides = array<i32>} : memref<16x128xf32, #tpu.memory_space<vmem>>, vector<16x128xf32>,
    } else {
    }
    %c0 = arith.constant 0 : index
    %c0_1 = arith.constant 0 : index
    %3 = vector.load %arg2[%c0, %c0_1] : memref<16x128xf32, #tpu.memory_space<vmem>>, vector<16x128xf32>
    %c0_2 = arith.constant 0 : index
    %c0_3 = arith.constant 0 : index
    %4 = vector.load %arg3[%c0_2, %c0_3] : memref<16x128xf32, #tpu.memory_space<vmem>>, vector<16x128xf32>
    %5 = arith.subf %4, %3 : vector<16x128xf32>
    %cst = arith.constant 5.000000e-01 : f32
    %6 = vector.broadcast %cst : f32 to vector<16x128xf32>
    %7 = arith.mulf %6, %5 : vector<16x128xf32>
    %cst_4 = arith.constant -5.000000e-01 : f32
    %8 = vector.broadcast %cst_4 : f32 to vector<16x128xf32>
    %9 = arith.mulf %8, %5 : vector<16x128xf32>
    %10 = arith.maximumf %7, %9 : vector<16x128xf32>
    %c0_5 = arith.constant 0 : index
    %c0_6 = arith.constant 0 : index
    %11 = vector.load %arg5[%c0_5, %c0_6] : memref<16x128xf32, #tpu.memory_space<vmem>>, vector<16x128xf32>
    %12 = arith.addf %11, %10 : vector<16x128xf32>
    %c0_7 = arith.constant 0 : index
    %c0_8 = arith.constant 0 : index
    %13 = vector.load %arg5[%c0_7, %c0_8] : memref<16x128xf32, #tpu.memory_space<vmem>>, vector<16x128xf32>
    tpu.vector_store %arg5[%c0_7, %c0_8], %12 {strides = array<i32>} : memref<16x128xf32, #tpu.memory_space<vmem>>, vector<16x128xf32>,
    %c0_i32_9 = arith.constant 0 : i32
    %14 = arith.cmpi eq, %arg1, %c0_i32_9 : i32
    %15 = arith.extui %14 : i1 to i32
    %c0_i32_10 = arith.constant 0 : i32
    %16 = arith.cmpi ne, %15, %c0_i32_10 : i32
    scf.if %16 {
      %c0_11 = arith.constant 0 : index
      %c0_12 = arith.constant 0 : index
      %17 = vector.load %arg5[%c0_11, %c0_12] : memref<16x128xf32, #tpu.memory_space<vmem>>, vector<16x128xf32>
      %cst_13 = arith.constant dense<0.000000e+00> : vector<128xf32>
      %18 = vector.multi_reduction <add>, %17, %cst_13 [0] : vector<16x128xf32> to vector<128xf32>
      %19 = vector.shape_cast %18 : vector<128xf32> to vector<1x128xf32>
      %20 = tpu.iota {dimensions = array<i32: 0>} : vector<8x128xi32>
      %c0_i32_14 = arith.constant 0 : i32
      %21 = vector.broadcast %c0_i32_14 : i32 to vector<8x128xi32>
      %22 = arith.cmpi eq, %20, %21 : vector<8x128xi32>
      %cst_15 = arith.constant 0.000000e+00 : f32
      %23 = vector.shape_cast %19 : vector<1x128xf32> to vector<1x128xf32>
      %24 = vector.broadcast %23 : vector<1x128xf32> to vector<8x128xf32>
      %25 = vector.broadcast %cst_15 : f32 to vector<8x128xf32>
      %26 = arith.select %22, %24, %25 : vector<8x128xi1>, vector<8x128xf32>
      %c0_16 = arith.constant 0 : index
      %c0_17 = arith.constant 0 : index
      %c0_18 = arith.constant 0 : index
      %27 = vector.load %arg4[%c0_16, %c0_17, %c0_18] : memref<1x8x128xf32, #tpu.memory_space<vmem>>, vector<1x8x128xf32>
      %28 = vector.shape_cast %27 : vector<1x8x128xf32> to vector<8x128xf32>
      %29 = vector.shape_cast %26 : vector<8x128xf32> to vector<1x8x128xf32>
      tpu.vector_store %arg4[%c0_16, %c0_17, %c0_18], %29 {strides = array<i32>} : memref<1x8x128xf32, #tpu.memory_space<vmem>>, vector<1x8x128xf32>,
    } else {
    }
    return
  }
  func.func @transform_0(%arg0: i32, %arg1: i32) -> (i32, i32) {
    %c1_i32 = arith.constant 1 : i32
    %0 = arith.muli %arg0, %c1_i32 : i32
    %1 = arith.addi %0, %arg1 : i32
    %c0_i32 = arith.constant 0 : i32
    %c0_i32_0 = arith.constant 0 : i32
    return %1, %c0_i32 : i32, i32
  }
  func.func @transform_1(%arg0: i32, %arg1: i32) -> (i32, i32) {
    %c1_i32 = arith.constant 1 : i32
    %0 = arith.muli %arg0, %c1_i32 : i32
    %1 = arith.addi %0, %arg1 : i32
    %c0_i32 = arith.constant 0 : i32
    %c0_i32_0 = arith.constant 0 : i32
    return %1, %c0_i32 : i32, i32
  }
  func.func @transform_2(%arg0: i32, %arg1: i32) -> (i32, i32, i32) {
    %c0_i32 = arith.constant 0 : i32
    %c0_i32_0 = arith.constant 0 : i32
    %c0_i32_1 = arith.constant 0 : i32
    return %arg0, %c0_i32, %c0_i32_0 : i32, i32, i32
  }
}

</mosaic_0001>

<bundles_post_ra>
// kernel: tpu_custom_call.1
= control target key start
LH: loop header
LB: loop body
LE: loop exit
PB: predicated region body
PF: predicated region fallthrough
CT: control target
= control target key end

     0   :  { %7 = vsyncpa [#allocation4], 0  ;;  %s209_s0 = inlined_call_operand.hbm [shape: f32[16,128], index: 0, kind: input, shape index: {}]   ;;  %s210_s1 = inlined_call_operand.hbm [shape: f32[16,128], index: 1, kind: input, shape index: {}]   ;;  %s211_s2 = inlined_call_operand.hbm [shape: f32[1,8,128], index: 2, kind: output, shape index: {}]  }
   0x1   :  { %8 = vsyncpa [#allocation7], 0 }
   0x2   :  { %9 = vsyncpa [#allocation5], 0  ;;  %s180_s9 = smov [#allocation3]  }
   0x3   :  { %s19_s10 = sshll.u32 %s180_s9, 4  ;;  %s20_s10 = int_to_ptr.vmem [resolvable:$true] %s19_s10 }
   0x4   :  { %s122_s11 = scalar_lea.vmem %s20_s10, 256  ;;  %p127_p1 = scmp.lt.s32.totalorder %s20_s10, %s20_s10 }
   0x5   :  { %p123_p0 = scmp.ne.s32.totalorder %s20_s10, %s122_s11  ;;  %p128_p2 = scmp.lt.s32.totalorder %s122_s11, %s122_s11 }
   0x7   :  { %p129_p3 = por %p128_p2, %p127_p1 }
   0x9   :  { %p130_p4 = pnand %p129_p3, %p123_p0 }
   0xb   :  { %133 = shalt.err (!%p130_p4)
}
   0xc   :  { %s181_s12 = smov 128   ;;  %s182_s13 = smov 8  }
   0xd   :  { %25 = dma.hbm_to_vmem [thread:$0]  %s209_s0, 256, %s20_s10, [#allocation4], %s181_s12, %s181_s12, %s182_s13  }
   0xe   :  { %s183_s16 = smov [#allocation6]  }
   0xf   :  { %s35_s17 = sshll.u32 %s183_s16, 4  ;;  %s36_s17 = int_to_ptr.vmem [resolvable:$true] %s35_s17 }
  0x10   :  { %s142_s18 = scalar_lea.vmem %s36_s17, 256  ;;  %p147_p6 = scmp.lt.s32.totalorder %s36_s17, %s36_s17 }
  0x11   :  { %p143_p5 = scmp.ne.s32.totalorder %s36_s17, %s142_s18  ;;  %p148_p7 = scmp.lt.s32.totalorder %s142_s18, %s142_s18 }
  0x13   :  { %p149_p8 = por %p148_p7, %p147_p6 }
  0x15   :  { %p150_p9 = pnand %p149_p8, %p143_p5 }
  0x17   :  { %153 = shalt.err (!%p150_p9)
}
  0x18   :  { %41 = dma.hbm_to_vmem [thread:$0]  %s210_s1, 256, %s36_s17, [#allocation7], %s181_s12, %s181_s12, %s182_s13  }
  0x19   :  { %174 = dma.done.wait [#allocation4], 256  }
  0x1a   :  { %175 = vsyncadd [#allocation4], 4294967040 }
  0x1b   :  { %176 = dma.done.wait [#allocation7], 256  }
  0x1c   :  { %177 = vsyncadd [#allocation7], 4294967040  ;;  %v58_v0 = vld [vmem:[#allocation3] sm:$0xff]  ;;  %v59_v1 = vld [vmem:[#allocation3 + $0x8] sm:$0xff]  ;;  %v88_v14 = vlaneseq  ;;  %s184_s0 = smov [#allocation8]  }
  0x1d   :  { %v60_v2 = vld [vmem:[#allocation6] sm:$0xff]  ;;  %v61_v3 = vld [vmem:[#allocation6 + $0x8] sm:$0xff]  ;;  %s99_s1 = sshll.u32 %s184_s0, 4  ;;  %s100_s1 = int_to_ptr.vmem [resolvable:$true] %s99_s1 }
  0x1e   :  { %v62_v4 = vsub.f32 %v60_v2, %v58_v0  ;;  %v63_v5 = vsub.f32 %v61_v3, %v59_v1  ;;  %v89_v17 = vshrl.u32 %v88_v14, 7  ;;  %s154_s21 = scalar_lea.vmem %s100_s1, 128  ;;  %p159_p11 = scmp.lt.s32.totalorder %s100_s1, %s100_s1 }
  0x1f   :  { %p155_p10 = scmp.ne.s32.totalorder %s100_s1, %s154_s21  ;;  %p160_p12 = scmp.lt.s32.totalorder %s154_s21, %s154_s21 }
  0x20   :  { %v64_v6 = vmul.f32 0.5, %v62_v4  ;;  %v66_v7 = vmul.f32 -0.5, %v62_v4  ;;  %v65_v8 = vmul.f32 0.5, %v63_v5  ;;  %v67_v9 = vmul.f32 -0.5, %v63_v5 }
  0x21   :  { %vm90_vm0 = vcmp.eq.s32.totalorder %v89_v17, 0  ;;  %p161_p13 = por %p160_p12, %p159_p11 }
  0x22   :  { %v68_v10 = vmax.f32 %v64_v6, %v66_v7  ;;  %v69_v11 = vmax.f32 %v65_v8, %v67_v9 }
  0x23   :  { %p162_p0 = pnand %p161_p13, %p155_p10 }
  0x24   :  { %v81_v12 = vadd.f32 %v69_v11, %v68_v10 }
  0x26   :  { %v82_v13 = vrot.slane %v81_v12, 4 }
  0x28   :  { %v83_v15 = vadd.f32 %v82_v13, %v81_v12 }
  0x2a   :  { %v84_v16 = vrot.slane %v83_v15, 2 }
  0x2c   :  { %v85_v18 = vadd.f32 %v84_v16, %v83_v15 }
  0x2e   :  { %v86_v19 = vrot.slane %v85_v18, 1 }
  0x30   :  { %v87_v20 = vadd.f32 %v86_v19, %v85_v18 }
  0x32   :  { %v91_v21 = vsel %vm90_vm0, %v87_v20, 0.0 }
  0x33   :  { %92 = vst [vmem:[#allocation8] sm:$0xff] %v91_v21 }
  0x34   :  { %165 = shalt.err (!%p162_p0)
}
  0x35   :  { %102 = dma.vmem_to_hbm [thread:$0]  %s100_s1, 128, %s211_s2, [#allocation5]  }
  0x36   :  { %178 = dma.done.wait [#allocation5], 128  }
  0x37   :  { %179 = vsyncadd [#allocation5], 4294967168 }
  0x38   :  { %106 = vsyncpa [#allocation4], 1 }
  0x39   :  { %107 = vsyncpa [#allocation7], 1 }
  0x3a   :  { %108 = vsyncpa [#allocation5], 1 }

</bundles_post_ra>
